<compile_context>
chip_gen: v5e
topology: v5e:2x2
jax: 0.10.0
libtpu: 0.0.40
codegen_flags: <defaults>
</compile_context>

<pallas_src>
import jax
import jax.numpy as jnp
from jax.experimental import pallas as pl
from jax.experimental.pallas import tpu as pltpu


def _round_up(x, m):
    return (x + m - 1) // m * m


def critic_kernel(x_ref, w1_ref, b1_ref, w2_ref, b2_ref, o_ref):
    # x: (TILE_B, in_dim) bf16   w1: (in_dim, H) bf16
    # b1: (1, H) f32             w2: (1, H) f32 (row layout)
    # b2: (1, 1) f32 scalar in SMEM     o: (TILE_B, 1) f32
    h = jnp.dot(x_ref[...], w1_ref[...],
                preferred_element_type=jnp.float32) + b1_ref[...]
    h = jnp.maximum(h, 0.0)                                   # ReLU (VPU)
    # Second layer (N=1): VPU multiply + lane reduce instead of MXU matmul.
    v = jnp.sum(h * w2_ref[...], axis=-1, keepdims=True) + b2_ref[0, 0]
    o_ref[...] = v                                            # (TILE_B, 1)


def critic_forward(concat_layer, w1, b1, w2, b2):
    """concat_layer: (B, 32 + hidden) float32.  Returns value of shape (B,)."""
    B, in_dim = concat_layer.shape
    hidden = w1.shape[1]
    assert w1.shape == (in_dim, hidden)
    assert w2.shape == (hidden, 1)

    # bf16 activations / first-layer weights (f32 accumulate in the kernel).
    x_bf16 = concat_layer.astype(jnp.bfloat16)
    w1_bf16 = w1.astype(jnp.bfloat16)
    b1_2d = b1.reshape(1, hidden).astype(jnp.float32)
    w2_row = w2.reshape(1, hidden).astype(jnp.float32)   # row layout for VPU mul
    b2_2d = b2.reshape(1, 1).astype(jnp.float32)

    # Batch tile: largest up to 512 rows (good fraction of HBM roofline),
    # 16-aligned for bf16 sublane packing.  Double-buffered x tiles +
    # resident weights stay far below every generation's VMEM budget
    # (including v7x's 32 MiB scoped default), so no vmem_limit override.
    tile_b = 512 if B >= 512 else _round_up(B, 16)
    padded_b = _round_up(B, tile_b)
    if padded_b != B:
        x_bf16 = jnp.pad(x_bf16, ((0, padded_b - B), (0, 0)))
    grid = (padded_b // tile_b,)

    out_2d = pl.pallas_call(
        critic_kernel,
        grid=grid,
        in_specs=[
            pl.BlockSpec((tile_b, in_dim), lambda i: (i, 0)),    # x: streamed
            pl.BlockSpec((in_dim, hidden), lambda i: (0, 0)),    # w1: resident
            pl.BlockSpec((1, hidden), lambda i: (0, 0)),         # b1: resident
            pl.BlockSpec((1, hidden), lambda i: (0, 0)),         # w2 row: resident
            pl.BlockSpec(memory_space=pltpu.MemorySpace.SMEM),   # b2: scalar
        ],
        out_specs=pl.BlockSpec((tile_b, 1), lambda i: (i, 0)),
        out_shape=jax.ShapeDtypeStruct((padded_b, 1), jnp.float32),
        compiler_params=pltpu.CompilerParams(
            dimension_semantics=("parallel",),   # shard batch across TCs (v7x)
        ),
    )(x_bf16, w1_bf16, b1_2d, w2_row, b2_2d)

    # value.reshape(-1) + strip batch padding — glue stays in plain JAX.
    return out_2d[:B, 0]


def init_params(key, hidden_size):
    """Deterministic init matching nn.Linear shapes (PyTorch-style uniform bounds)."""
    in_dim = 32 + hidden_size
    k1, k2, k3, k4 = jax.random.split(key, 4)
    bound1 = 1.0 / jnp.sqrt(in_dim)
    bound2 = 1.0 / jnp.sqrt(hidden_size)
    # Stored as (in, out), i.e. transposed relative to PyTorch's (out, in).
    w1 = jax.random.uniform(k1, (in_dim, hidden_size), jnp.float32, -bound1, bound1)
    b1 = jax.random.uniform(k2, (hidden_size,), jnp.float32, -bound1, bound1)
    w2 = jax.random.uniform(k3, (hidden_size, 1), jnp.float32, -bound2, bound2)
    b2 = jax.random.uniform(k4, (1,), jnp.float32, -bound2, bound2)
    return w1, b1, w2, b2


def _reference(x, w1, b1, w2, b2):
    return (jnp.maximum(x @ w1 + b1, 0.0) @ w2 + b2).reshape(-1)


if __name__ == "__main__":
    hidden_size = 32
    in_dim = 32 + hidden_size

    key = jax.random.PRNGKey(0)
    k_x, k_p, k_x2 = jax.random.split(key, 3)
    w1, b1, w2, b2 = init_params(k_p, hidden_size)

    # Small shape matching the module (batch=8).
    concat_layer = jax.random.normal(k_x, (8, in_dim), jnp.float32)
    value = critic_forward(concat_layer, w1, b1, w2, b2)
    value = jax.block_until_ready(value)
    ref = _reference(concat_layer, w1, b1, w2, b2)
    assert value.shape == (8,)
    # bf16 matmul path -> loosened tolerance vs the f32 reference.
    assert jnp.allclose(value, ref, atol=2e-2, rtol=2e-2)

    # Second check: ragged batch that exercises the multi-tile grid + padding.
    concat_layer2 = jax.random.normal(k_x2, (600, in_dim), jnp.float32)
    value2 = jax.block_until_ready(critic_forward(concat_layer2, w1, b1, w2, b2))
    ref2 = _reference(concat_layer2, w1, b1, w2, b2)
    assert value2.shape == (600,)
    assert jnp.allclose(value2, ref2, atol=2e-2, rtol=2e-2)

    print("KERNEL_OK")
</pallas_src>

<mosaic_0001>
module attributes {stable_mosaic.version = 11 : i64} {
  func.func @critic_kernel(%arg0: i32, %arg1: memref<16x64xbf16, #tpu.memory_space<vmem>>, %arg2: memref<64x32xbf16, #tpu.memory_space<vmem>>, %arg3: memref<1x32xf32, #tpu.memory_space<vmem>>, %arg4: memref<1x32xf32, #tpu.memory_space<vmem>>, %arg5: memref<1x1xf32, #tpu.memory_space<smem>>, %arg6: memref<16x1xf32, #tpu.memory_space<vmem>>) attributes {dimension_semantics = [#tpu.dimension_semantics<parallel>], iteration_bounds = array<i64: 1>, scalar_prefetch = 0 : i64, scratch_operands = 0 : i64, tpu.core_type = #tpu.core_type<tc>, window_params = [{transform_indices = @transform_0, window_bounds = array<i64: 16, 64>}, {pipeline_mode = #tpu.pipeline_mode<synchronous>, transform_indices = @transform_1, window_bounds = array<i64: 64, 32>}, {pipeline_mode = #tpu.pipeline_mode<synchronous>, transform_indices = @transform_2, window_bounds = array<i64: 1, 32>}, {pipeline_mode = #tpu.pipeline_mode<synchronous>, transform_indices = @transform_3, window_bounds = array<i64: 1, 32>}, {transform_indices = @transform_4, window_bounds = array<i64: 1, 1>}, {transform_indices = @transform_5, window_bounds = array<i64: 16, 1>}]} {
    %c0 = arith.constant 0 : index
    %c0_0 = arith.constant 0 : index
    %0 = vector.load %arg1[%c0, %c0_0] : memref<16x64xbf16, #tpu.memory_space<vmem>>, vector<16x64xbf16>
    %c0_1 = arith.constant 0 : index
    %c0_2 = arith.constant 0 : index
    %1 = vector.load %arg2[%c0_1, %c0_2] : memref<64x32xbf16, #tpu.memory_space<vmem>>, vector<64x32xbf16>
    %cst = arith.constant dense<0.000000e+00> : vector<16x32xf32>
    %2 = tpu.matmul %0, %1, %cst {dimension_numbers = #tpu.dot_dimension_numbers<[1], [0], [0], [1], [0, 0, 1, 1], [], []>} : vector<16x64xbf16>, vector<64x32xbf16>, vector<16x32xf32> -> vector<16x32xf32>
    %c0_3 = arith.constant 0 : index
    %c0_4 = arith.constant 0 : index
    %3 = vector.load %arg3[%c0_3, %c0_4] : memref<1x32xf32, #tpu.memory_space<vmem>>, vector<1x32xf32>
    %4 = vector.broadcast %3 : vector<1x32xf32> to vector<16x32xf32>
    %5 = arith.addf %2, %4 : vector<16x32xf32>
    %cst_5 = arith.constant 0.000000e+00 : f32
    %6 = vector.broadcast %cst_5 : f32 to vector<16x32xf32>
    %7 = arith.maximumf %5, %6 : vector<16x32xf32>
    %c0_6 = arith.constant 0 : index
    %c0_7 = arith.constant 0 : index
    %8 = vector.load %arg4[%c0_6, %c0_7] : memref<1x32xf32, #tpu.memory_space<vmem>>, vector<1x32xf32>
    %9 = vector.broadcast %8 : vector<1x32xf32> to vector<16x32xf32>
    %10 = arith.mulf %7, %9 : vector<16x32xf32>
    %cst_8 = arith.constant dense<0.000000e+00> : vector<16xf32>
    %11 = vector.multi_reduction <add>, %10, %cst_8 [1] : vector<16x32xf32> to vector<16xf32>
    %12 = vector.shape_cast %11 : vector<16xf32> to vector<16x1xf32>
    %c0_9 = arith.constant 0 : index
    %c0_10 = arith.constant 0 : index
    %13 = memref.load %arg5[%c0_9, %c0_10] : memref<1x1xf32, #tpu.memory_space<smem>>
    %14 = vector.broadcast %13 : f32 to vector<16x1xf32>
    %15 = arith.addf %12, %14 : vector<16x1xf32>
    %c0_11 = arith.constant 0 : index
    %c0_12 = arith.constant 0 : index
    %16 = vector.load %arg6[%c0_11, %c0_12] : memref<16x1xf32, #tpu.memory_space<vmem>>, vector<16x1xf32>
    tpu.vector_store %arg6[%c0_11, %c0_12], %15 {strides = array<i32>} : memref<16x1xf32, #tpu.memory_space<vmem>>, vector<16x1xf32>,
    return
  }
  func.func @transform_0(%arg0: i32) -> (i32, i32) {
    %c0_i32 = arith.constant 0 : i32
    %c0_i32_0 = arith.constant 0 : i32
    return %arg0, %c0_i32 : i32, i32
  }
  func.func @transform_1(%arg0: i32) -> (i32, i32) {
    %c0_i32 = arith.constant 0 : i32
    %c0_i32_0 = arith.constant 0 : i32
    %c0_i32_1 = arith.constant 0 : i32
    return %c0_i32, %c0_i32_0 : i32, i32
  }
  func.func @transform_2(%arg0: i32) -> (i32, i32) {
    %c0_i32 = arith.constant 0 : i32
    %c0_i32_0 = arith.constant 0 : i32
    %c0_i32_1 = arith.constant 0 : i32
    return %c0_i32, %c0_i32_0 : i32, i32
  }
  func.func @transform_3(%arg0: i32) -> (i32, i32) {
    %c0_i32 = arith.constant 0 : i32
    %c0_i32_0 = arith.constant 0 : i32
    %c0_i32_1 = arith.constant 0 : i32
    return %c0_i32, %c0_i32_0 : i32, i32
  }
  func.func @transform_4(%arg0: i32) -> (i32, i32) {
    %c0_i32 = arith.constant 0 : i32
    %c0_i32_0 = arith.constant 0 : i32
    %c0_i32_1 = arith.constant 0 : i32
    return %c0_i32, %c0_i32_0 : i32, i32
  }
  func.func @transform_5(%arg0: i32) -> (i32, i32) {
    %c0_i32 = arith.constant 0 : i32
    %c0_i32_0 = arith.constant 0 : i32
    return %arg0, %c0_i32 : i32, i32
  }
}

</mosaic_0001>

<bundles_post_ra>
// kernel: tpu_custom_call.1
= control target key start
LH: loop header
LB: loop body
LE: loop exit
PB: predicated region body
PF: predicated region fallthrough
CT: control target
= control target key end

     0   :  { %vm65_vm0 = vcmask 523264   ;;  %vm91_vm1 = vcmask 261120   ;;  %vm102_vm2 = vcmask 7168   ;;  %s197_s1 = inlined_call_operand.vmem [shape: bf16[64,32], index: 1, kind: input, shape index: {}]   ;;  %s198_s2 = inlined_call_operand.vmem [shape: f32[1,32], index: 2, kind: input, shape index: {}]   ;;  %s199_s0 = inlined_call_operand.vmem [shape: bf16[16,64], index: 0, kind: input, shape index: {}]   ;;  %s200_s3 = inlined_call_operand.vmem [shape: f32[1,32], index: 3, kind: input, shape index: {}]   ;;  %s201_s4 = inlined_call_operand.<no memory space> [shape: f32[1,1], index: 4, kind: input, shape index: {}]   ;;  %s202_s5 = inlined_call_operand.vmem [shape: f32[16,1], index: 5, kind: output, shape index: {}]  }
   0x1   :  { %v134_v0 = vld [vmem:[%s197_s1 + $0x18] sm:$0xff]  ;;  %v133_v1 = vld [vmem:[%s197_s1 + $0x10] sm:$0xff]  ;;  %v132_v2 = vld [vmem:[%s197_s1 + $0x8] sm:$0xff]  ;;  %v99_v17 = vstv %s201_s4 }
   0x2   :  { %73 = vmatpush.bf16.msra.mxu0 %v134_v0  ;;  %v131_v3 = vld [vmem:[%s197_s1] sm:$0xff] }
   0x3   :  { %v130_v4 = vld [vmem:[%s199_s0] sm:$0xff] }
   0x4   :  { %v135_v5 = vld [vmem:[%s198_s2] ss:$0 sm:$0xff] }
   0x5   :  { %v136_v8 = vld [vmem:[%s200_s3] ss:$0 sm:$0xff] }
   0x6   :  { %74 = vmatpush.bf16.msra.mxu0 %v133_v1 }
   0xa   :  { %75 = vmatpush.bf16.msra.mxu0 %v132_v2 }
   0xe   :  { %76 = vmatpush.bf16.msra.mxu0 %v131_v3 }
  0x11   :  { %129 = vmatmul.msk.bf16.vlgmr.msra.gmra.mxu0 %vm65_vm0, %v130_v4 }
  0x8e   :  { %v78_v6 = vpop.f32.mrf.mxu0 }
  0x8f   :  { %v79_v7 = vadd.f32 %v135_v5, %v78_v6 }
  0x91   :  { %v83_v9 = vmax.f32 %v79_v7, 0.0 }
  0x93   :  { %v89_v10 = vmul.f32 %v136_v8, %v83_v9 }
  0x95   :  { %v92_v11 = vsel %vm91_vm1, %v89_v10, 0.0 }
  0x96   :  { %v80_v12 = vpop.f32.mrf.mxu0  ;;  %93 = vadd.xlane.f32.xlu0 %v92_v11 }
  0x97   :  { %v81_v13 = vadd.f32 %v135_v5, %v80_v12 }
  0x99   :  { %v84_v14 = vmax.f32 %v81_v13, 0.0 }
  0x9b   :  { %v90_v15 = vmul.f32 %v136_v8, %v84_v14 }
  0x9d   :  { %v95_v16 = vsel %vm91_vm1, %v90_v15, 0.0 }
  0x9e   :  { %96 = vadd.xlane.f32.xlu0 %v95_v16 }
 0x109   :  { %v94_v18 = vpop.xlane.xlu0 %93 }
 0x10a   :  { %v100_v19 = vadd.f32 %v99_v17, %v94_v18 }
 0x10c   :  { %103 = vst.msk [vmem:[%s202_s5] sm:$0xff] %vm102_vm2, %v100_v19 }
 0x111   :  { %v97_v20 = vpop.xlane.xlu0 %96 }
 0x112   :  { %v101_v21 = vadd.f32 %v99_v17, %v97_v20 }
 0x114   :  { %104 = vst.msk [vmem:[%s202_s5 + $0x8] sm:$0xff] %vm102_vm2, %v101_v21 }

</bundles_post_ra>
